<compile_context>
chip_gen: v7x
topology: tpu7x:2x2x1
jax: 0.10.0
libtpu: 0.0.40
codegen_flags: <defaults>
</compile_context>

<pallas_src>
import jax
import jax.numpy as jnp
from jax.experimental import pallas as pl
from jax.experimental.pallas import tpu as pltpu


def _ceil_div(a, b):
    return -(-a // b)


def _round_up(x, m):
    return ((x + m - 1) // m) * m


# ----------------------------------------------------------------------------
# Kernels
# ----------------------------------------------------------------------------
def _fam_kernel_single(x_ref, w_ref, b_ref, o_ref):
    # x_ref: (TB, E)  w_ref: (E, H_pad)  b_ref: (1, H_pad)  o_ref: (TB, H_pad)
    # Whole contraction in one shot: matmul + bias + L2 row-normalize.
    x = jnp.tanh(x_ref[...].astype(jnp.float32)).astype(w_ref.dtype)
    y = jnp.dot(x, w_ref[...], preferred_element_type=jnp.float32)
    y = y + b_ref[...].astype(jnp.float32)
    sq = jnp.sum(y * y, axis=1, keepdims=True)            # row ||y||^2 (XLU)
    inv = jax.lax.rsqrt(jnp.maximum(sq, 1e-24))           # == 1/max(||y||,1e-12)
    o_ref[...] = (y * inv).astype(o_ref.dtype)


def _fam_kernel_stream(x_ref, w_ref, b_ref, o_ref, acc_ref):
    # x_ref: (TB, TK)  w_ref: (TK, H_pad)  b_ref: (1, H_pad)
    # o_ref: (TB, H_pad)  acc_ref: (TB, H_pad) f32 scratch
    k = pl.program_id(1)

    @pl.when(k == 0)
    def _():
        # Init with the broadcast bias -> no bias add in the epilogue.
        acc_ref[...] = (jnp.zeros(acc_ref.shape, jnp.float32)
                        + b_ref[...].astype(jnp.float32))

    x = jnp.tanh(x_ref[...].astype(jnp.float32)).astype(w_ref.dtype)
    acc_ref[...] += jnp.dot(x, w_ref[...], preferred_element_type=jnp.float32)

    @pl.when(k == pl.num_programs(1) - 1)
    def _():
        y = acc_ref[...]
        sq = jnp.sum(y * y, axis=1, keepdims=True)
        inv = jax.lax.rsqrt(jnp.maximum(sq, 1e-24))
        o_ref[...] = (y * inv).astype(o_ref.dtype)


# ----------------------------------------------------------------------------
# Tile selection
# ----------------------------------------------------------------------------
def _choose_tiles(B, E, H_pad, x_bytes, w_bytes, o_bytes, budget, tb, tk,
                  k_tiles=None):
    # >= 2 batch tiles once B is big enough -> lets the "parallel" batch axis
    # shard across v7x's two TensorCores (zero cost on v5e/v6e).
    min_b_tiles = 2 if B >= 256 else 1
    nb = max(_ceil_div(B, tb), min_b_tiles)
    nk = 1 if k_tiles is None else max(1, int(k_tiles))
    prev = None
    for _ in range(64):
        TB = _round_up(_ceil_div(B, nb), 8)
        TK = E if nk == 1 else _round_up(_ceil_div(E, nk), 128)
        need = (2 * TB * TK * x_bytes          # x, double-buffered
                + 2 * TK * H_pad * w_bytes     # weight, double-buffered
                + 2 * TB * H_pad * o_bytes     # output, double-buffered
                + TB * H_pad * 4)              # f32 accumulator / epilogue
        if need <= budget or (TB, TK) == prev:
            break
        prev = (TB, TK)
        if nk == 1 and E > tk:
            nk = _ceil_div(E, tk)              # start K-streaming at target tile
        elif TB > 256:
            nb += 1
        elif TK > 256:
            nk += 1
        elif TB > 8:
            nb += 1
        elif TK > 128:
            nk += 1
        else:
            break
    return nb, TB, nk, TK


# ----------------------------------------------------------------------------
# Wrapper
# ----------------------------------------------------------------------------
def _fam_jnp(text, weight, bias, out_dtype):
    x = jnp.tanh(text.astype(jnp.float32)).astype(weight.dtype)
    y = jnp.dot(x, weight, preferred_element_type=jnp.float32)
    y = y + bias.astype(jnp.float32)
    inv = jax.lax.rsqrt(jnp.maximum(jnp.sum(y * y, axis=1, keepdims=True), 1e-24))
    return (y * inv).astype(out_dtype)


def fam_forward(text, weight, bias, *, tb=1024, tk=1024,
                mxu_dtype=jnp.bfloat16, allow_fallback=True, k_tiles=None):
    """text: (B, E); weight: (E, H); bias: (H,) -> (B, H) in text.dtype."""
    B, E = text.shape
    E_w, H = weight.shape
    assert E_w == E, "weight must be (embed_size, hidden_size)"
    out_dtype = text.dtype

    # bf16 MXU operands (f32 accumulation in-kernel). In a real model the cast
    # would live at parameter setup, not in the per-call path.
    if mxu_dtype is not None and weight.dtype == jnp.float32:
        w_use = weight.astype(mxu_dtype)
    else:
        w_use = weight

    # Tiny problems: pure launch/grid overhead -> let XLA fuse it.
    if allow_fallback and B * E * H < (1 << 20):
        return _fam_jnp(text, w_use, bias, out_dtype)

    # ---- VMEM budget (per-generation) ---------------------------------------
    try:
        vmem_cap = int(pltpu.get_tpu_info().vmem_capacity_bytes)
    except Exception:
        vmem_cap = 64 * 1024 * 1024            # conservative (v7x per-core)
    budget = int(vmem_cap * 0.6)               # headroom for compiler scratch
    vmem_limit = int(vmem_cap * 0.9)

    # ---- tile geometry: ceil-split the real dims -----------------------------
    H_pad = _round_up(H, 128)                  # lane-dense output; zero cols add 0 to norm
    x_bytes = jnp.dtype(text.dtype).itemsize
    w_bytes = jnp.dtype(w_use.dtype).itemsize
    o_bytes = jnp.dtype(out_dtype).itemsize
    nb, TB, nk, TK = _choose_tiles(B, E, H_pad, x_bytes, w_bytes, o_bytes,
                                   budget, tb, tk, k_tiles=k_tiles)
    B_pad = nb * TB
    E_pad = E if nk == 1 else nk * TK

    # ---- pad only where the layout actually requires it ----------------------
    x_p = text
    if (B_pad, E_pad) != (B, E):
        x_p = jnp.pad(text, ((0, B_pad - B), (0, E_pad - E)))
    w_p = w_use
    if (E_pad, H_pad) != (E, H):
        w_p = jnp.pad(w_use, ((0, E_pad - E), (0, H_pad - H)))
    b_p = bias.reshape(1, H)
    if H_pad != H:
        b_p = jnp.pad(b_p, ((0, 0), (0, H_pad - H)))

    if nk == 1:
        # Single-shot: no accumulator scratch, no init/finalize branching.
        out = pl.pallas_call(
            _fam_kernel_single,
            out_shape=jax.ShapeDtypeStruct((B_pad, H_pad), out_dtype),
            grid_spec=pltpu.PrefetchScalarGridSpec(
                num_scalar_prefetch=0,
                grid=(nb,),
                in_specs=[
                    pl.BlockSpec((TB, E), lambda bi: (bi, 0)),       # activations
                    pl.BlockSpec((E, H_pad), lambda bi: (0, 0)),     # full weight, resident
                    pl.BlockSpec((1, H_pad), lambda bi: (0, 0)),     # bias, resident
                ],
                out_specs=pl.BlockSpec((TB, H_pad), lambda bi: (bi, 0)),
            ),
            compiler_params=pltpu.CompilerParams(
                dimension_semantics=("parallel",),
                vmem_limit_bytes=vmem_limit),
        )(x_p, w_p, b_p)
    else:
        # Large-E fallback: stream K with an f32 accumulator.
        # (If profiling shows exposed weight DMA, add pipeline_mode=pl.Buffered(3)
        #  to the weight BlockSpec.)
        out = pl.pallas_call(
            _fam_kernel_stream,
            out_shape=jax.ShapeDtypeStruct((B_pad, H_pad), out_dtype),
            grid_spec=pltpu.PrefetchScalarGridSpec(
                num_scalar_prefetch=0,
                grid=(nb, nk),
                in_specs=[
                    pl.BlockSpec((TB, TK), lambda bi, ki: (bi, ki)),   # activations
                    pl.BlockSpec((TK, H_pad), lambda bi, ki: (ki, 0)), # weight (streamed over K)
                    pl.BlockSpec((1, H_pad), lambda bi, ki: (0, 0)),   # bias (resident)
                ],
                out_specs=pl.BlockSpec((TB, H_pad), lambda bi, ki: (bi, 0)),
                scratch_shapes=[pltpu.VMEM((TB, H_pad), jnp.float32)],
            ),
            compiler_params=pltpu.CompilerParams(
                dimension_semantics=("parallel", "arbitrary"),
                vmem_limit_bytes=vmem_limit),
        )(x_p, w_p, b_p)

    if (B_pad, H_pad) != (B, H):
        out = out[:B, :H]
    return out


# ----------------------------------------------------------------------------
# Reference (mxu_dtype rounds the matmul operands like the kernel does)
# ----------------------------------------------------------------------------
def reference_forward(text, weight, bias, mxu_dtype=None):
    x = jnp.tanh(text.astype(jnp.float32))
    w = weight.astype(jnp.float32)
    if mxu_dtype is not None:
        x = x.astype(mxu_dtype).astype(jnp.float32)
        w = w.astype(mxu_dtype).astype(jnp.float32)
    y = jnp.dot(x, w, precision=jax.lax.Precision.HIGHEST) + bias.astype(jnp.float32)
    norm = jnp.maximum(jnp.linalg.norm(y, axis=1, keepdims=True), 1e-12)
    return (y / norm).astype(text.dtype)


if __name__ == "__main__":
    key = jax.random.PRNGKey(0)
    initrange = 0.2  # mirrors init_weights(): U(-0.2, 0.2), bias zero

    # Small shapes consistent with the module: batch=8, embed_size=32, hidden=32.
    batch, embed_size, hidden_size = 8, 32, 32
    k_x, k_w, k_rest = jax.random.split(key, 3)
    text = jax.random.normal(k_x, (batch, embed_size), dtype=jnp.float32)
    weight = jax.random.uniform(k_w, (embed_size, hidden_size),
                                minval=-initrange, maxval=initrange,
                                dtype=jnp.float32)
    bias = jnp.zeros((hidden_size,), dtype=jnp.float32)

    # Exercise the kernel at small shapes (fallback disabled). f32 MXU path for
    # a strict check of the kernel structure, then the default bf16 fast path.
    out_f32 = jax.block_until_ready(
        fam_forward(text, weight, bias, mxu_dtype=None, allow_fallback=False))
    ref_f32 = reference_forward(text, weight, bias, mxu_dtype=None)
    assert out_f32.shape == (batch, hidden_size)
    assert jnp.allclose(out_f32, ref_f32, atol=1e-5, rtol=1e-5), "mismatch (small, f32)"

    out_bf = jax.block_until_ready(
        fam_forward(text, weight, bias, allow_fallback=False))
    ref_bf = reference_forward(text, weight, bias, mxu_dtype=jnp.bfloat16)
    assert jnp.allclose(out_bf, ref_bf, atol=1e-4, rtol=1e-4), "mismatch (small, bf16)"

    # Larger shapes: exercises >=2 batch tiles, the zero-padding tile choice,
    # and the single-shot (no K-streaming) path.
    kb_x, kb_w, kb_b = jax.random.split(k_rest, 3)
    B2, E2, H2 = 640, 1152, 256
    text2 = jax.random.normal(kb_x, (B2, E2), dtype=jnp.float32)
    weight2 = jax.random.uniform(kb_w, (E2, H2), minval=-initrange,
                                 maxval=initrange, dtype=jnp.float32)
    bias2 = jax.random.uniform(kb_b, (H2,), minval=-initrange,
                               maxval=initrange, dtype=jnp.float32)
    out2 = jax.block_until_ready(fam_forward(text2, weight2, bias2))
    ref2 = reference_forward(text2, weight2, bias2, mxu_dtype=jnp.bfloat16)
    assert out2.shape == (B2, H2)
    assert jnp.allclose(out2, ref2, atol=1e-3, rtol=1e-3), "mismatch (tiled, bf16)"

    # Force the K-streamed accumulator path (large-E fallback) so it is tested too.
    out3 = jax.block_until_ready(fam_forward(text2, weight2, bias2, k_tiles=3))
    assert jnp.allclose(out3, ref2, atol=1e-3, rtol=1e-3), "mismatch (K-streamed)"

    print("KERNEL_OK")
</pallas_src>

<mosaic_0001>
module attributes {stable_mosaic.version = 11 : i64} {
  func.func @_fam_kernel_single(%arg0: i32, %arg1: memref<8x32xf32, #tpu.memory_space<vmem>>, %arg2: memref<32x128xf32, #tpu.memory_space<vmem>>, %arg3: memref<1x128xf32, #tpu.memory_space<vmem>>, %arg4: memref<8x128xf32, #tpu.memory_space<vmem>>) attributes {dimension_semantics = [#tpu.dimension_semantics<parallel>], iteration_bounds = array<i64: 1>, scalar_prefetch = 0 : i64, scratch_operands = 0 : i64, tpu.core_type = #tpu.core_type<tc>, window_params = [{transform_indices = @transform_0, window_bounds = array<i64: 8, 32>}, {pipeline_mode = #tpu.pipeline_mode<synchronous>, transform_indices = @transform_1, window_bounds = array<i64: 32, 128>}, {pipeline_mode = #tpu.pipeline_mode<synchronous>, transform_indices = @transform_2, window_bounds = array<i64: 1, 128>}, {transform_indices = @transform_3, window_bounds = array<i64: 8, 128>}]} {
    %c0 = arith.constant 0 : index
    %c0_0 = arith.constant 0 : index
    %0 = vector.load %arg1[%c0, %c0_0] : memref<8x32xf32, #tpu.memory_space<vmem>>, vector<8x32xf32>
    %1 = math.tanh %0 : vector<8x32xf32>
    %c0_1 = arith.constant 0 : index
    %c0_2 = arith.constant 0 : index
    %2 = vector.load %arg2[%c0_1, %c0_2] : memref<32x128xf32, #tpu.memory_space<vmem>>, vector<32x128xf32>
    %cst = arith.constant dense<0.000000e+00> : vector<8x128xf32>
    %3 = tpu.matmul %1, %2, %cst {dimension_numbers = #tpu.dot_dimension_numbers<[1], [0], [0], [1], [0, 0, 1, 1], [], []>} : vector<8x32xf32>, vector<32x128xf32>, vector<8x128xf32> -> vector<8x128xf32>
    %c0_3 = arith.constant 0 : index
    %c0_4 = arith.constant 0 : index
    %4 = vector.load %arg3[%c0_3, %c0_4] : memref<1x128xf32, #tpu.memory_space<vmem>>, vector<1x128xf32>
    %5 = vector.broadcast %4 : vector<1x128xf32> to vector<8x128xf32>
    %6 = arith.addf %3, %5 : vector<8x128xf32>
    %7 = arith.mulf %6, %6 : vector<8x128xf32>
    %cst_5 = arith.constant dense<0.000000e+00> : vector<8xf32>
    %8 = vector.multi_reduction <add>, %7, %cst_5 [1] : vector<8x128xf32> to vector<8xf32>
    %9 = vector.shape_cast %8 : vector<8xf32> to vector<8x1xf32>
    %cst_6 = arith.constant 1.000000e-24 : f32
    %10 = vector.broadcast %cst_6 : f32 to vector<8x1xf32>
    %11 = arith.maximumf %9, %10 : vector<8x1xf32>
    %12 = math.rsqrt %11 : vector<8x1xf32>
    %13 = vector.broadcast %12 : vector<8x1xf32> to vector<8x128xf32>
    %14 = arith.mulf %6, %13 : vector<8x128xf32>
    %c0_7 = arith.constant 0 : index
    %c0_8 = arith.constant 0 : index
    %15 = vector.load %arg4[%c0_7, %c0_8] : memref<8x128xf32, #tpu.memory_space<vmem>>, vector<8x128xf32>
    tpu.vector_store %arg4[%c0_7, %c0_8], %14 {strides = array<i32>} : memref<8x128xf32, #tpu.memory_space<vmem>>, vector<8x128xf32>,
    return
  }
  func.func @transform_0(%arg0: i32) -> (i32, i32) {
    %c0_i32 = arith.constant 0 : i32
    %c0_i32_0 = arith.constant 0 : i32
    return %arg0, %c0_i32 : i32, i32
  }
  func.func @transform_1(%arg0: i32) -> (i32, i32) {
    %c0_i32 = arith.constant 0 : i32
    %c0_i32_0 = arith.constant 0 : i32
    %c0_i32_1 = arith.constant 0 : i32
    return %c0_i32, %c0_i32_0 : i32, i32
  }
  func.func @transform_2(%arg0: i32) -> (i32, i32) {
    %c0_i32 = arith.constant 0 : i32
    %c0_i32_0 = arith.constant 0 : i32
    %c0_i32_1 = arith.constant 0 : i32
    return %c0_i32, %c0_i32_0 : i32, i32
  }
  func.func @transform_3(%arg0: i32) -> (i32, i32) {
    %c0_i32 = arith.constant 0 : i32
    %c0_i32_0 = arith.constant 0 : i32
    return %arg0, %c0_i32 : i32, i32
  }
}

</mosaic_0001>

<bundles_post_ra>
// kernel: tpu_custom_call.1
= control target key start
LH: loop header
LB: loop body
LE: loop exit
PB: predicated region body
PF: predicated region fallthrough
CT: control target
= control target key end

     0   :  { %8 = vsyncpa [#allocation3], 0  ;;  %s333_s0 = inlined_call_operand.hbm [shape: f32[8,32], index: 0, kind: input, shape index: {}]   ;;  %s334_s1 = inlined_call_operand.hbm [shape: f32[32,128], index: 1, kind: input, shape index: {}]   ;;  %s335_s2 = inlined_call_operand.vmem [shape: f32[1,128], index: 2, kind: input, shape index: {}]   ;;  %s336_s3 = inlined_call_operand.hbm [shape: f32[8,128], index: 3, kind: output, shape index: {}]  }
   0x1   :  { %9 = vsyncpa [#allocation6], 0 }
   0x2   :  { %10 = vsyncpa [#allocation4], 0  ;;  %s259_s12 = smov [#allocation2]   ;;  %s260_s14 = smov [#allocation5]  }
   0x3   :  { %s17_s13 = sshll.u32 %s259_s12, 4  ;;  %s26_s15 = sshll.u32 %s260_s14, 4  ;;  %s18_s13 = int_to_ptr.vmem [resolvable:$true] %s17_s13  ;;  %s287_s15 = int_to_ptr.vmem [resolvable:$true] %s26_s15 }
   0x4   :  { %s187_s18 = scalar_lea.hbm %s333_s0, 128 }
   0x5   :  { %p188_p0 = scmp.ne.s32.totalorder %s333_s0, %s187_s18  ;;  %p191_p1 = scmp.lt.u32.totalorder %s187_s18, %s333_s0 }
   0x7   :  { %p193_p2 = pnand %p191_p1, %p188_p0 }
   0x9   :  { %196 = shalt.err (!%p193_p2)
}
   0xa   :  { %s197_s23 = scalar_lea.vmem %s18_s13, 128  ;;  %p202_p4 = scmp.lt.s32.totalorder %s18_s13, %s18_s13 }
   0xb   :  { %p198_p3 = scmp.ne.s32.totalorder %s18_s13, %s197_s23  ;;  %p203_p5 = scmp.lt.s32.totalorder %s197_s23, %s197_s23 }
   0xd   :  { %p204_p6 = por %p203_p5, %p202_p4 }
   0xf   :  { %p205_p7 = pnand %p204_p6, %p198_p3 }
  0x11   :  { %208 = shalt.err (!%p205_p7)
}
  0x12   :  { %20 = dma.hbm_to_vmem [thread:$0]  %s333_s0, 128, %s18_s13, [#allocation3]  }
  0x13   :  { %s209_s28 = scalar_lea.hbm %s334_s1, 512 }
  0x14   :  { %p210_p8 = scmp.ne.s32.totalorder %s334_s1, %s209_s28  ;;  %p213_p9 = scmp.lt.u32.totalorder %s209_s28, %s334_s1 }
  0x16   :  { %p215_p10 = pnand %p213_p9, %p210_p8 }
  0x18   :  { %218 = shalt.err (!%p215_p10)
}
  0x19   :  { %s219_s6 = scalar_lea.vmem %s287_s15, 512  ;;  %p224_p12 = scmp.lt.s32.totalorder %s287_s15, %s287_s15 }
  0x1a   :  { %p220_p11 = scmp.ne.s32.totalorder %s287_s15, %s219_s6  ;;  %p225_p13 = scmp.lt.s32.totalorder %s219_s6, %s219_s6 }
  0x1c   :  { %p226_p0 = por %p225_p13, %p224_p12 }
  0x1e   :  { %p227_p1 = pnand %p226_p0, %p220_p11 }
  0x20   :  { %230 = shalt.err (!%p227_p1)
}
  0x21   :  { %s261_s0 = smov 128   ;;  %s262_s7 = smov 8  }
  0x22   :  { %32 = dma.hbm_to_vmem [thread:$0]  %s334_s1, 512, %s287_s15, [#allocation6], %s261_s0, %s261_s0, %s262_s7  }
  0x23   :  { %253 = dma.done.wait [#allocation3], 128  }
  0x24   :  { %254 = vsyncadd [#allocation3], 4294967168 }
  0x25   :  { %255 = dma.done.wait [#allocation6], 512  }
  0x26   :  { %256 = vsyncadd [#allocation6], 4294966784  ;;  %v263_v0 = vmov 0.0|0.0   ;;  %vm264_vm0 = vmmov 0   ;;  %v265_v1 = vmov 0.0   ;;  %v43_v2 = vld [vmem:[#allocation5] sm:$0xff] }
  0x27   :  { %169 = vmatprep.subr.bf16.mxu0 %v263_v0  ;;  %166 = vmatprep.mubr.msk.f32.mxu0 %vm264_vm0, %v265_v1  ;;  %v44_v3 = vld [vmem:[#allocation5 + $0x8] sm:$0xff]  ;;  %v45_v4 = vld [vmem:[#allocation5 + $0x10] sm:$0xff]  ;;  %v46_v6 = vld [vmem:[#allocation5 + $0x18] sm:$0xff]  ;;  %vm54_vm1 = vcmask 261120   ;;  %s266_s11 = smov [#allocation7]  }
  0x28   :  { %v170_v5 = vpack.c.bf16 %v44_v3, %v43_v2  ;;  %v41_v7 = vld [vmem:[#allocation2] sm:$0xff]  ;;  %v173_v8 = vpack.c.bf16 %v46_v6, %v45_v4  ;;  %s141_s12 = sshll.u32 %s266_s11, 4  ;;  %s142_s12 = int_to_ptr.vmem [resolvable:$true] %s141_s12 }
  0x29   :  { %183 = vtanh.f32 %v41_v7  ;;  %v151_v10 = vld [vmem:[%s335_s2] ss:$0 sm:$0xff]  ;;  %s231_s13 = scalar_lea.vmem %s142_s12, 128  ;;  %p236_p3 = scmp.lt.s32.totalorder %s142_s12, %s142_s12 }
  0x2a   :  { %171 = vmatpush3.bf16.msra.mxu0 %v170_v5  ;;  %p232_p2 = scmp.ne.s32.totalorder %s142_s12, %s231_s13  ;;  %p237_p4 = scmp.lt.s32.totalorder %s231_s13, %s231_s13 }
  0x2b   :  { %172 = vmatprep.subr.bf16.mxu0 %v263_v0 }
  0x2c   :  { %p238_p5 = por %p237_p4, %p236_p3 }
  0x2e   :  { %174 = vmatpush3.bf16.msra.mxu0 %v173_v8  ;;  %p239_p6 = pnand %p238_p5, %p232_p2 }
  0x33   :  { %v184_v9 = vpop.eup %183 }
  0x34   :  { %167 = vmatmul.mubr.msk.f32.vlgmr.msra.gmra.mrb[0].mxu0 %vm54_vm1, %v184_v9 }
 0x107   :  { %v124_v11 = vpop.f32.mrb[0].mxu0 }
 0x108   :  { %v125_v12 = vadd.f32 %v151_v10, %v124_v11  ;;  %v168_v13 = vpop.f32.mrb[1].mxu0 }
 0x10a   :  { %v128_v14 = vmul.f32 %v125_v12, %v125_v12 }
 0x10c   :  { %129 = vadd.xlane.f32.xlu0 %v128_v14 }
 0x199   :  { %v130_v15 = vpop.xlane.xlu0 %129 }
 0x19a   :  { %v131_v16 = vmax.f32 %v130_v15, 1e-24 }
 0x19c   :  { %185 = vrsqrt.f32 %v131_v16 }
 0x1a6   :  { %v186_v17 = vpop.eup %185 }
 0x1a7   :  { %v133_v18 = vmul.f32 %v186_v17, %v125_v12 }
 0x1a9   :  { %134 = vst [vmem:[#allocation7] sm:$0xff] %v133_v18 }
 0x1aa   :  { %242 = shalt.err (!%p239_p6)
}
 0x1ab   :  { %s243_s15 = scalar_lea.hbm %s336_s3, 128 }
 0x1ac   :  { %p244_p7 = scmp.ne.s32.totalorder %s336_s3, %s243_s15  ;;  %p247_p8 = scmp.lt.u32.totalorder %s243_s15, %s336_s3 }
 0x1ae   :  { %p249_p9 = pnand %p247_p8, %p244_p7 }
 0x1b0   :  { %252 = shalt.err (!%p249_p9)
}
 0x1b1   :  { %144 = dma.vmem_to_hbm [thread:$0]  %s142_s12, 128, %s336_s3, [#allocation4]  }
 0x1b2   :  { %257 = dma.done.wait [#allocation4], 128  }
 0x1b3   :  { %258 = vsyncadd [#allocation4], 4294967168 }
 0x1b4   :  { %148 = vsyncpa [#allocation3], 1 }
 0x1b5   :  { %149 = vsyncpa [#allocation6], 1 }
 0x1b6   :  { %150 = vsyncpa [#allocation4], 1 }

</bundles_post_ra>
